<compile_context>
chip_gen: v5e
topology: v5e:2x2
jax: 0.10.0
libtpu: 0.0.40
codegen_flags: <defaults>
</compile_context>

<pallas_src>
from functools import partial

import numpy as np
import jax
import jax.numpy as jnp
from jax.experimental import pallas as pl
from jax.experimental.pallas import tpu as pltpu

_LANES = 128  # batch chunk for the vectorized path (one vreg of lanes)


def _grid_loss_scalar_kernel(delta_ref, out_ref, *, w_xx, w_yy, w_t):
    """Small-batch path: (B, 6) delta in SMEM, closed-form quadratic per row.

    w_* are compile-time constants = grid second moments * 1/(B*N).
    """
    b = delta_ref.shape[0]
    total = jnp.float32(0.0)
    for i in range(b):  # B is small & static -> unrolled scalar work
        da = delta_ref[i, 0]
        db = delta_ref[i, 1]
        dc = delta_ref[i, 2]
        dd = delta_ref[i, 3]
        de = delta_ref[i, 4]
        df = delta_ref[i, 5]
        total = total + (w_xx * (da * da + dd * dd)
                         + w_yy * (db * db + de * de)
                         + w_t * (dc * dc + df * df))
    out_ref[0, 0] = total


def _grid_loss_vec_kernel(delta_ref, out_ref, *, w_xx, w_yy, w_t):
    """Large-batch path: one (6, 128) lane-dense delta chunk in VMEM.

    Writes a (1, 1, 128) lane-dense partial block (summed over the 6 params);
    the wrapper sums the partials outside the kernel.
    """
    d = delta_ref[...]                                      # (6, 128) f32
    row = jax.lax.broadcasted_iota(jnp.int32, d.shape, 0)   # param index 0..5
    is_x = (row == 0) | (row == 3)                          # -> S_xx weight
    is_y = (row == 1) | (row == 4)                          # -> S_yy weight
    w = jnp.where(is_x, w_xx, jnp.where(is_y, w_yy, w_t))
    wsq = d * d * w                                         # (6, 128)
    out_ref[...] = jnp.sum(wsq, axis=0, keepdims=True).reshape(1, 1, _LANES)


def _exact_grid_moments(grid_size):
    """Second moments of the fixed [-1,1]^2 meshgrid (compile-time floats)."""
    coords = np.linspace(-1.0, 1.0, grid_size).astype(np.float64)
    s_axis = float(np.sum(coords * coords))
    n_pts = float(grid_size * grid_size)
    # Full meshgrid over a symmetric linspace: S_x = S_y = S_xy = 0 exactly,
    # and S_xx = S_yy = grid_size * sum(coords^2).
    s_xx = float(grid_size) * s_axis
    s_yy = s_xx
    return s_xx, s_yy, n_pts


def transformed_grid_loss(theta, theta_gt, *, grid_size=20,
                          small_batch_threshold=16):
    """Affine TransformedGridLoss forward. theta/theta_gt: (B, 6) or (B, 2, 3)."""
    b = theta.shape[0]
    theta = jnp.asarray(theta, jnp.float32).reshape(b, -1)
    theta_gt = jnp.asarray(theta_gt, jnp.float32).reshape(b, -1)
    assert theta.shape[1] == 6 and theta_gt.shape == theta.shape, (
        "affine theta must have 6 parameters per batch element")

    s_xx, s_yy, n_pts = _exact_grid_moments(grid_size)
    scale = 1.0 / (float(b) * n_pts)            # mean over (batch, points)
    w_xx, w_yy, w_t = s_xx * scale, s_yy * scale, n_pts * scale

    # Single input / single DMA: the delta is one fused XLA subtraction.
    delta = theta - theta_gt                    # (B, 6) f32

    if b <= small_batch_threshold:
        kernel = partial(_grid_loss_scalar_kernel, w_xx=w_xx, w_yy=w_yy, w_t=w_t)
        out = pl.pallas_call(
            kernel,
            out_shape=jax.ShapeDtypeStruct((1, 1), jnp.float32),
            in_specs=[pl.BlockSpec(memory_space=pltpu.MemorySpace.SMEM)],
            out_specs=pl.BlockSpec(memory_space=pltpu.MemorySpace.SMEM),
        )(delta)
        return out[0, 0]

    # Vectorized path: batch on the 128-lane axis, 6 params on sublanes.
    b_pad = ((b + _LANES - 1) // _LANES) * _LANES
    num_chunks = b_pad // _LANES
    delta_t = jnp.pad(delta, ((0, b_pad - b), (0, 0))).T    # (6, b_pad); pads = 0

    kernel = partial(_grid_loss_vec_kernel, w_xx=w_xx, w_yy=w_yy, w_t=w_t)
    partials = pl.pallas_call(
        kernel,
        out_shape=jax.ShapeDtypeStruct((num_chunks, 1, _LANES), jnp.float32),
        grid=(num_chunks,),
        in_specs=[pl.BlockSpec((6, _LANES), lambda i: (0, i))],
        out_specs=pl.BlockSpec((1, 1, _LANES), lambda i: (i, 0, 0)),
        compiler_params=pltpu.CompilerParams(
            dimension_semantics=("parallel",)),   # v7x: 2 TCs split the batch
    )(delta_t)
    return jnp.sum(partials)


# ----------------------------- reference & test -----------------------------

def _make_grid(grid_size=20):
    # Same construction as the PyTorch module __init__ (reference only).
    axis_coords = np.linspace(-1, 1, grid_size)
    n = grid_size * grid_size
    X, Y = np.meshgrid(axis_coords, axis_coords)
    P = np.concatenate((np.reshape(X, (1, n)), np.reshape(Y, (1, n))), axis=0)
    return jnp.asarray(P.astype(np.float32))     # (2, N)


def _reference_loss(theta, theta_gt, p_grid):
    # Pure-JAX reference of the PyTorch forward (affine branch).
    b = theta.shape[0]
    P = jnp.broadcast_to(p_grid[None], (b, 2, p_grid.shape[1]))

    def warp(th):
        m = th.reshape(b, 2, 3)
        return jnp.einsum("bij,bjn->bin", m[:, :, :2], P) + m[:, :, 2][:, :, None]

    diff = warp(theta) - warp(theta_gt)
    return jnp.mean(jnp.sum(diff ** 2, axis=1))


if __name__ == "__main__":
    grid_size = 20
    p_grid = _make_grid(grid_size)
    identity = jnp.array([1.0, 0.0, 0.0, 0.0, 1.0, 0.0], dtype=jnp.float32)
    key = jax.random.PRNGKey(0)
    k1, k2, k3, k4 = jax.random.split(key, 4)

    # Small batch (B=2): scalar SMEM path.
    theta_s = identity[None] + 0.1 * jax.random.normal(k1, (2, 6), jnp.float32)
    theta_s_gt = identity[None] + 0.1 * jax.random.normal(k2, (2, 6), jnp.float32)
    loss_s = transformed_grid_loss(theta_s, theta_s_gt, grid_size=grid_size)
    jax.block_until_ready(loss_s)
    ref_s = _reference_loss(theta_s, theta_s_gt, p_grid)
    assert jnp.allclose(loss_s, ref_s, rtol=1e-4, atol=1e-6), (loss_s, ref_s)

    # Larger batch (B=300, not a multiple of 128): vectorized, lane-dense path.
    theta_l = identity[None] + 0.1 * jax.random.normal(k3, (300, 6), jnp.float32)
    theta_l_gt = identity[None] + 0.1 * jax.random.normal(k4, (300, 6), jnp.float32)
    loss_l = transformed_grid_loss(theta_l, theta_l_gt, grid_size=grid_size)
    jax.block_until_ready(loss_l)
    ref_l = _reference_loss(theta_l, theta_l_gt, p_grid)
    assert jnp.allclose(loss_l, ref_l, rtol=1e-4, atol=1e-6), (loss_l, ref_l)

    print("KERNEL_OK")
</pallas_src>

<mosaic_0001>
module attributes {stable_mosaic.version = 11 : i64} {
  func.func @_grid_loss_scalar_kernel(%arg0: memref<2x6xf32, #tpu.memory_space<smem>>, %arg1: memref<1x1xf32, #tpu.memory_space<smem>>) attributes {dimension_semantics = [], scalar_prefetch = 0 : i64, scratch_operands = 0 : i64, tpu.core_type = #tpu.core_type<tc>} {
    %c0 = arith.constant 0 : index
    %c0_0 = arith.constant 0 : index
    %0 = memref.load %arg0[%c0, %c0_0] : memref<2x6xf32, #tpu.memory_space<smem>>
    %c0_1 = arith.constant 0 : index
    %c1 = arith.constant 1 : index
    %1 = memref.load %arg0[%c0_1, %c1] : memref<2x6xf32, #tpu.memory_space<smem>>
    %c0_2 = arith.constant 0 : index
    %c2 = arith.constant 2 : index
    %2 = memref.load %arg0[%c0_2, %c2] : memref<2x6xf32, #tpu.memory_space<smem>>
    %c0_3 = arith.constant 0 : index
    %c3 = arith.constant 3 : index
    %3 = memref.load %arg0[%c0_3, %c3] : memref<2x6xf32, #tpu.memory_space<smem>>
    %c0_4 = arith.constant 0 : index
    %c4 = arith.constant 4 : index
    %4 = memref.load %arg0[%c0_4, %c4] : memref<2x6xf32, #tpu.memory_space<smem>>
    %c0_5 = arith.constant 0 : index
    %c5 = arith.constant 5 : index
    %5 = memref.load %arg0[%c0_5, %c5] : memref<2x6xf32, #tpu.memory_space<smem>>
    %6 = arith.mulf %0, %0 : f32
    %7 = arith.mulf %3, %3 : f32
    %8 = arith.addf %6, %7 : f32
    %cst = arith.constant 0.184210524 : f32
    %9 = arith.mulf %cst, %8 : f32
    %10 = arith.mulf %1, %1 : f32
    %11 = arith.mulf %4, %4 : f32
    %12 = arith.addf %10, %11 : f32
    %cst_6 = arith.constant 0.184210524 : f32
    %13 = arith.mulf %cst_6, %12 : f32
    %14 = arith.addf %9, %13 : f32
    %15 = arith.mulf %2, %2 : f32
    %16 = arith.mulf %5, %5 : f32
    %17 = arith.addf %15, %16 : f32
    %cst_7 = arith.constant 5.000000e-01 : f32
    %18 = arith.mulf %cst_7, %17 : f32
    %19 = arith.addf %14, %18 : f32
    %cst_8 = arith.constant 0.000000e+00 : f32
    %20 = arith.addf %cst_8, %19 : f32
    %c1_9 = arith.constant 1 : index
    %c0_10 = arith.constant 0 : index
    %21 = memref.load %arg0[%c1_9, %c0_10] : memref<2x6xf32, #tpu.memory_space<smem>>
    %c1_11 = arith.constant 1 : index
    %c1_12 = arith.constant 1 : index
    %22 = memref.load %arg0[%c1_11, %c1_12] : memref<2x6xf32, #tpu.memory_space<smem>>
    %c1_13 = arith.constant 1 : index
    %c2_14 = arith.constant 2 : index
    %23 = memref.load %arg0[%c1_13, %c2_14] : memref<2x6xf32, #tpu.memory_space<smem>>
    %c1_15 = arith.constant 1 : index
    %c3_16 = arith.constant 3 : index
    %24 = memref.load %arg0[%c1_15, %c3_16] : memref<2x6xf32, #tpu.memory_space<smem>>
    %c1_17 = arith.constant 1 : index
    %c4_18 = arith.constant 4 : index
    %25 = memref.load %arg0[%c1_17, %c4_18] : memref<2x6xf32, #tpu.memory_space<smem>>
    %c1_19 = arith.constant 1 : index
    %c5_20 = arith.constant 5 : index
    %26 = memref.load %arg0[%c1_19, %c5_20] : memref<2x6xf32, #tpu.memory_space<smem>>
    %27 = arith.mulf %21, %21 : f32
    %28 = arith.mulf %24, %24 : f32
    %29 = arith.addf %27, %28 : f32
    %cst_21 = arith.constant 0.184210524 : f32
    %30 = arith.mulf %cst_21, %29 : f32
    %31 = arith.mulf %22, %22 : f32
    %32 = arith.mulf %25, %25 : f32
    %33 = arith.addf %31, %32 : f32
    %cst_22 = arith.constant 0.184210524 : f32
    %34 = arith.mulf %cst_22, %33 : f32
    %35 = arith.addf %30, %34 : f32
    %36 = arith.mulf %23, %23 : f32
    %37 = arith.mulf %26, %26 : f32
    %38 = arith.addf %36, %37 : f32
    %cst_23 = arith.constant 5.000000e-01 : f32
    %39 = arith.mulf %cst_23, %38 : f32
    %40 = arith.addf %35, %39 : f32
    %41 = arith.addf %20, %40 : f32
    %c0_24 = arith.constant 0 : index
    %c0_25 = arith.constant 0 : index
    %42 = memref.load %arg1[%c0_24, %c0_25] : memref<1x1xf32, #tpu.memory_space<smem>>
    memref.store %41, %arg1[%c0_24, %c0_25] : memref<1x1xf32, #tpu.memory_space<smem>>
    return
  }
}

</mosaic_0001>

<bundles_post_ra>
// kernel: tpu_custom_call.1
= control target key start
LH: loop header
LB: loop body
LE: loop exit
PB: predicated region body
PF: predicated region fallthrough
CT: control target
= control target key end

     0   :  { %s141_s0 = inlined_call_operand.hbm [shape: f32[2,6], index: 0, kind: input, shape index: {}]   ;;  %s142_s1 = inlined_call_operand.hbm [shape: f32[1,1], index: 1, kind: output, shape index: {}]  }
   0x1   :  { %143 = sst [smem:[#allocation8_spill]] %s142_s1 }
   0x2   :  { %6 = vsyncpa [#allocation3], 0 }
   0x3   :  { %7 = vsyncpa [#allocation4], 0  ;;  %s13_s8 = sshll.u32 %s141_s0, 4  ;;  %s123_s9 = smov [#allocation2]   ;;  %s14_s8 = int_to_ptr.hbm [resolvable:$true] %s13_s8 }
   0x4   :  { %16 = dma.hbm_to_smem %s14_s8, 32, %s123_s9, [#allocation3]  }
   0x5   :  { %119 = dma.done.wait [#allocation3], 32  }
   0x6   :  { %120 = vsyncadd [#allocation3], 4294967264 }
   0x7   :  { %21 = sfence }
   0x8   :  { %s22_s10 = sld [smem:[#allocation2]] }
   0x9   :  { %s82_s11 = sld [smem:[#allocation2 + $0x1]] }
   0xa   :  { %s83_s12 = sld [smem:[#allocation2 + $0x2]] }
   0xb   :  { %s84_s13 = sld [smem:[#allocation2 + $0x3]] }
   0xc   :  { %s85_s14 = sld [smem:[#allocation2 + $0x4]] }
   0xd   :  { %s86_s15 = sld [smem:[#allocation2 + $0x5]] }
   0xe   :  { %s28_s16 = smul.f32 %s22_s10, %s22_s10  ;;  %s87_s17 = sld [smem:[#allocation2 + $0x80]] }
   0xf   :  { %s32_s18 = smul.f32 %s82_s11, %s82_s11  ;;  %s88_s19 = sld [smem:[#allocation2 + $0x81]] }
  0x10   :  { %s37_s20 = smul.f32 %s83_s12, %s83_s12  ;;  %s89_s21 = sld [smem:[#allocation2 + $0x82]] }
  0x11   :  { %s29_s22 = smul.f32 %s84_s13, %s84_s13  ;;  %s90_s0 = sld [smem:[#allocation2 + $0x83]] }
  0x12   :  { %s33_s23 = smul.f32 %s85_s14, %s85_s14  ;;  %s91_s24 = sld [smem:[#allocation2 + $0x84]] }
  0x13   :  { %s30_s25 = sadd.f32 %s29_s22, %s28_s16  ;;  %s38_s26 = smul.f32 %s86_s15, %s86_s15 }
  0x14   :  { %s34_s27 = sadd.f32 %s33_s23, %s32_s18  ;;  %s49_s28 = smul.f32 %s87_s17, %s87_s17 }
  0x15   :  { %s31_s29 = smul.f32 0.18421052, %s30_s25  ;;  %s39_s30 = sadd.f32 %s38_s26, %s37_s20 }
  0x16   :  { %s35_s2 = smul.f32 0.18421052, %s34_s27  ;;  %s92_s3 = sld [smem:[#allocation2 + $0x85]] }
  0x17   :  { %s40_s4 = smul.f32 0.5, %s39_s30  ;;  %s144_s17 = sld [smem:[#allocation8_spill]] }
  0x18   :  { %s50_s5 = smul.f32 %s90_s0, %s90_s0  ;;  %s36_s7 = sadd.f32 %s35_s2, %s31_s29 }
  0x19   :  { %s53_s6 = smul.f32 %s88_s19, %s88_s19  ;;  %s124_s19 = smov [#allocation5]  }
  0x1a   :  { %s54_s8 = smul.f32 %s91_s24, %s91_s24  ;;  %s51_s9 = sadd.f32 %s50_s5, %s49_s28 }
  0x1b   :  { %s58_s10 = smul.f32 %s89_s21, %s89_s21  ;;  %s41_s16 = sadd.f32 %s40_s4, %s36_s7 }
  0x1c   :  { %s55_s11 = sadd.f32 %s54_s8, %s53_s6  ;;  %s59_s12 = smul.f32 %s92_s3, %s92_s3 }
  0x1d   :  { %s52_s13 = smul.f32 0.18421052, %s51_s9  ;;  %s71_s22 = sshll.u32 %s144_s17, 4  ;;  %s72_s22 = int_to_ptr.hbm [resolvable:$true] %s71_s22 }
  0x1e   :  { %s56_s14 = smul.f32 0.18421052, %s55_s11  ;;  %s60_s1 = sadd.f32 %s59_s12, %s58_s10 }
  0x20   :  { %s57_s20 = sadd.f32 %s56_s14, %s52_s13  ;;  %s61_s23 = smul.f32 0.5, %s60_s1 }
  0x22   :  { %s62_s25 = sadd.f32 %s61_s23, %s57_s20 }
  0x24   :  { %s63_s0 = sadd.f32 %s62_s25, %s41_s16 }
  0x26   :  { %65 = sst [smem:[#allocation5]] %s63_s0 }
  0x27   :  { %74 = dma.smem_to_hbm %s124_s19, 16, %s72_s22, [#allocation4]  }
  0x28   :  { %121 = dma.done.wait [#allocation4], 16  }
  0x29   :  { %122 = vsyncadd [#allocation4], 4294967280 }
  0x2a   :  { %79 = sfence }
  0x2b   :  { %80 = vsyncpa [#allocation3], 1 }
  0x2c   :  { %81 = vsyncpa [#allocation4], 1 }

</bundles_post_ra>
